<compile_context>
chip_gen: v7x
topology: tpu7x:2x2x1
jax: 0.10.0
libtpu: 0.0.40
codegen_flags: <defaults>
</compile_context>

<pallas_src>
import jax
import jax.numpy as jnp
from jax.experimental import pallas as pl
from jax.experimental.pallas import tpu as pltpu


# ---------------------------------------------------------------------------
# Kernel
# ---------------------------------------------------------------------------
def _matmul_kernel(a_ref, b_ref, o_ref, acc_ref):
    # a_ref: (tm, tl)   b_ref: (tl, tn)   o_ref: (tm, tn)   acc_ref: (tm, tn) f32
    @pl.when(pl.program_id(2) == 0)
    def _init():
        acc_ref[...] = jnp.zeros_like(acc_ref)

    acc_ref[...] += jnp.dot(
        a_ref[...], b_ref[...], preferred_element_type=jnp.float32
    )

    @pl.when(pl.program_id(2) == pl.num_programs(2) - 1)
    def _finalize():
        o_ref[...] = acc_ref[...].astype(o_ref.dtype)


# ---------------------------------------------------------------------------
# Tile selection (VMEM-budgeted; conservative enough for v7x's 64 MiB VMEM)
# ---------------------------------------------------------------------------
_VMEM_BUDGET = 40 * 1024 * 1024   # explicit buffer budget (headroom under 64 MiB)
_VMEM_LIMIT = 48 * 1024 * 1024    # scoped limit passed to Mosaic (< v7x physical)
_MAX_TM = 1024                    # M tile cap (bigger gives diminishing returns)
_MAX_TN = 2048                    # K(out) tile cap when tiling the N axis
_MAX_TL_FULL = 4096               # keep full L resident below this size


def _round_up(x, m):
    return ((x + m - 1) // m) * m


def _round_down(x, m):
    return (x // m) * m


def _choose_tiles(M, L, K, isz_a, isz_b, isz_o):
    # Reduction (L) tile: must divide L exactly (OOB reads on a reduction axis
    # would corrupt the accumulator), and must be a multiple of 128 when tiled.
    if L <= _MAX_TL_FULL or L % 128 != 0:
        # TODO(synk): very large L that is not a multiple of 128 keeps the full-L
        # block resident (correct, but VMEM-heavy); would need in-kernel masking.
        tl = L
    else:
        tl = 2048
        while L % tl != 0:
            tl -= 128

    # Output-column (K) tile: full K when its double-buffered B tile fits in
    # ~1/4 of the budget, else a 128-aligned tile (edge block store is masked).
    tn_cap = max(128, _round_down(_VMEM_BUDGET // 4 // max(1, 2 * tl * isz_b), 128))
    tn = K if K <= tn_cap else min(_MAX_TN, tn_cap)

    # M tile: the streamed dimension -- largest 8-aligned tile the budget allows.
    # Per-step VMEM = 2*tm*tl*isz_a (A) + 2*tl*tn*isz_b (B) + 2*tm*tn*isz_o (C)
    #                 + tm*tn*4 (f32 accumulator scratch)
    fixed = 2 * tl * tn * isz_b
    per_row = 2 * tl * isz_a + 2 * tn * isz_o + 4 * tn
    tm = (_VMEM_BUDGET - fixed) // per_row
    tm = max(8, min(_round_down(tm, 8), _MAX_TM, _round_up(M, 8)))
    return tm, tn, tl


# ---------------------------------------------------------------------------
# Wrapper
# ---------------------------------------------------------------------------
@jax.jit
def tensor_matrix_multiply(A, B):
    """C[b,i,j,k] = sum_l A[b,i,j,l] * B[l,k]; output dtype follows A."""
    b, i, j, l = A.shape
    l2, k = B.shape
    assert l2 == l, "B.shape[0] must equal A.shape[3]"

    out_dtype = A.dtype
    if B.dtype != A.dtype:
        # Keep the MXU operands in a single (native) dtype; B is tiny vs A.
        B = B.astype(A.dtype)

    M = b * i * j
    A2 = A.reshape(M, l)  # contiguous collapse -> no data movement under jit

    isz_a = jnp.dtype(A.dtype).itemsize
    isz_b = jnp.dtype(B.dtype).itemsize
    isz_o = jnp.dtype(out_dtype).itemsize
    tm, tn, tl = _choose_tiles(M, l, k, isz_a, isz_b, isz_o)

    grid = (pl.cdiv(M, tm), pl.cdiv(k, tn), l // tl)

    cost = pl.CostEstimate(
        flops=2 * M * l * k,
        transcendentals=0,
        bytes_accessed=M * l * isz_a + l * k * isz_b + M * k * isz_o,
    )

    # TODO(synk): when k < 128 (lane-sparse output) the edge stores are masked
    # vst.msk; a lane-dense repack of the output slab is left out for simplicity.
    out = pl.pallas_call(
        _matmul_kernel,
        out_shape=jax.ShapeDtypeStruct((M, k), out_dtype),
        grid_spec=pltpu.PrefetchScalarGridSpec(
            num_scalar_prefetch=0,
            grid=grid,
            in_specs=[
                pl.BlockSpec((tm, tl), lambda m, n, kk: (m, kk)),
                pl.BlockSpec((tl, tn), lambda m, n, kk: (kk, n)),
            ],
            out_specs=pl.BlockSpec((tm, tn), lambda m, n, kk: (m, n)),
            scratch_shapes=[pltpu.VMEM((tm, tn), jnp.float32)],
        ),
        compiler_params=pltpu.CompilerParams(
            dimension_semantics=("parallel", "parallel", "arbitrary"),
            vmem_limit_bytes=_VMEM_LIMIT,
        ),
        cost_estimate=cost,
    )(A2, B)

    return out.reshape(b, i, j, k)


# ---------------------------------------------------------------------------
# Test
# ---------------------------------------------------------------------------
if __name__ == "__main__":
    key = jax.random.PRNGKey(0)
    ka, kb, kc, kd = jax.random.split(key, 4)

    # Case 1: small shapes consistent with the module spec.
    b, i, j, l, k = 2, 4, 8, 32, 64
    A = jax.random.normal(ka, (b, i, j, l), dtype=jnp.float32)
    B = jax.random.normal(kb, (l, k), dtype=jnp.float32)
    C = jax.block_until_ready(tensor_matrix_multiply(A, B))
    C_ref = jnp.einsum("bijl,lk->bijk", A, B)
    assert C.shape == (b, i, j, k)
    assert jnp.allclose(C, C_ref, atol=1e-4, rtol=1e-4), "mismatch vs reference (1)"

    # Case 2: ragged M (b*i*j not a multiple of 8) exercises the masked edge
    # block instead of the old pad/slice path.
    b2, i2, j2, l2, k2 = 3, 5, 7, 128, 96
    A2 = jax.random.normal(kc, (b2, i2, j2, l2), dtype=jnp.float32)
    B2 = jax.random.normal(kd, (l2, k2), dtype=jnp.float32)
    C2 = jax.block_until_ready(tensor_matrix_multiply(A2, B2))
    C2_ref = jnp.einsum("bijl,lk->bijk", A2, B2)
    assert C2.shape == (b2, i2, j2, k2)
    assert jnp.allclose(C2, C2_ref, atol=1e-4, rtol=1e-4), "mismatch vs reference (2)"

    print("KERNEL_OK")
</pallas_src>

<mosaic_0001>
module attributes {stable_mosaic.version = 11 : i64} {
  func.func @_matmul_kernel(%arg0: i32, %arg1: i32, %arg2: i32, %arg3: memref<64x32xf32, #tpu.memory_space<vmem>>, %arg4: memref<32x64xf32, #tpu.memory_space<vmem>>, %arg5: memref<64x64xf32, #tpu.memory_space<vmem>>, %arg6: memref<64x64xf32, #tpu.memory_space<vmem>>) attributes {dimension_semantics = [#tpu.dimension_semantics<parallel>, #tpu.dimension_semantics<parallel>, #tpu.dimension_semantics<arbitrary>], iteration_bounds = array<i64: 1, 1, 1>, scalar_prefetch = 0 : i64, scratch_operands = 1 : i64, tpu.core_type = #tpu.core_type<tc>, window_params = [{transform_indices = @transform_0, window_bounds = array<i64: 64, 32>}, {transform_indices = @transform_1, window_bounds = array<i64: 32, 64>}, {transform_indices = @transform_2, window_bounds = array<i64: 64, 64>}]} {
    %c0_i32 = arith.constant 0 : i32
    %0 = arith.cmpi eq, %arg2, %c0_i32 : i32
    %1 = arith.extui %0 : i1 to i32
    %c0_i32_0 = arith.constant 0 : i32
    %2 = arith.cmpi ne, %1, %c0_i32_0 : i32
    scf.if %2 {
      %cst_10 = arith.constant 0.000000e+00 : f32
      %12 = vector.broadcast %cst_10 : f32 to vector<64x64xf32>
      %c0_11 = arith.constant 0 : index
      %c0_12 = arith.constant 0 : index
      %13 = vector.load %arg6[%c0_11, %c0_12] : memref<64x64xf32, #tpu.memory_space<vmem>>, vector<64x64xf32>
      tpu.vector_store %arg6[%c0_11, %c0_12], %12 {strides = array<i32>} : memref<64x64xf32, #tpu.memory_space<vmem>>, vector<64x64xf32>,
    } else {
    }
    %c0 = arith.constant 0 : index
    %c0_1 = arith.constant 0 : index
    %3 = vector.load %arg6[%c0, %c0_1] : memref<64x64xf32, #tpu.memory_space<vmem>>, vector<64x64xf32>
    %c0_2 = arith.constant 0 : index
    %c0_3 = arith.constant 0 : index
    %4 = vector.load %arg3[%c0_2, %c0_3] : memref<64x32xf32, #tpu.memory_space<vmem>>, vector<64x32xf32>
    %c0_4 = arith.constant 0 : index
    %c0_5 = arith.constant 0 : index
    %5 = vector.load %arg4[%c0_4, %c0_5] : memref<32x64xf32, #tpu.memory_space<vmem>>, vector<32x64xf32>
    %cst = arith.constant dense<0.000000e+00> : vector<64x64xf32>
    %6 = tpu.matmul %4, %5, %cst {dimension_numbers = #tpu.dot_dimension_numbers<[1], [0], [0], [1], [0, 0, 1, 1], [], []>} : vector<64x32xf32>, vector<32x64xf32>, vector<64x64xf32> -> vector<64x64xf32>
    %7 = arith.addf %3, %6 : vector<64x64xf32>
    %c0_6 = arith.constant 0 : index
    %c0_7 = arith.constant 0 : index
    %8 = vector.load %arg6[%c0_6, %c0_7] : memref<64x64xf32, #tpu.memory_space<vmem>>, vector<64x64xf32>
    tpu.vector_store %arg6[%c0_6, %c0_7], %7 {strides = array<i32>} : memref<64x64xf32, #tpu.memory_space<vmem>>, vector<64x64xf32>,
    %c0_i32_8 = arith.constant 0 : i32
    %9 = arith.cmpi eq, %arg2, %c0_i32_8 : i32
    %10 = arith.extui %9 : i1 to i32
    %c0_i32_9 = arith.constant 0 : i32
    %11 = arith.cmpi ne, %10, %c0_i32_9 : i32
    scf.if %11 {
      %c0_10 = arith.constant 0 : index
      %c0_11 = arith.constant 0 : index
      %12 = vector.load %arg6[%c0_10, %c0_11] : memref<64x64xf32, #tpu.memory_space<vmem>>, vector<64x64xf32>
      %c0_12 = arith.constant 0 : index
      %c0_13 = arith.constant 0 : index
      %13 = vector.load %arg5[%c0_12, %c0_13] : memref<64x64xf32, #tpu.memory_space<vmem>>, vector<64x64xf32>
      tpu.vector_store %arg5[%c0_12, %c0_13], %12 {strides = array<i32>} : memref<64x64xf32, #tpu.memory_space<vmem>>, vector<64x64xf32>,
    } else {
    }
    return
  }
  func.func @transform_0(%arg0: i32, %arg1: i32, %arg2: i32) -> (i32, i32) {
    %c0_i32 = arith.constant 0 : i32
    return %arg0, %arg2 : i32, i32
  }
  func.func @transform_1(%arg0: i32, %arg1: i32, %arg2: i32) -> (i32, i32) {
    %c0_i32 = arith.constant 0 : i32
    return %arg2, %arg1 : i32, i32
  }
  func.func @transform_2(%arg0: i32, %arg1: i32, %arg2: i32) -> (i32, i32) {
    %c0_i32 = arith.constant 0 : i32
    return %arg0, %arg1 : i32, i32
  }
}

</mosaic_0001>

<bundles_post_ra>
// kernel: tensor_matrix_multiply.1
= control target key start
LH: loop header
LB: loop body
LE: loop exit
PB: predicated region body
PF: predicated region fallthrough
CT: control target
= control target key end

     0   :  { %7 = vsyncpa [#allocation4], 0  ;;  %s485_s0 = inlined_call_operand.hbm [shape: f32[64,32], index: 0, kind: input, shape index: {}]   ;;  %s486_s1 = inlined_call_operand.hbm [shape: f32[32,64], index: 1, kind: input, shape index: {}]   ;;  %s487_s2 = inlined_call_operand.hbm [shape: f32[64,64], index: 2, kind: output, shape index: {}]  }
   0x1   :  { %8 = vsyncpa [#allocation7], 0 }
   0x2   :  { %9 = vsyncpa [#allocation5], 0  ;;  %s387_s9 = smov [#allocation3]   ;;  %s315_s13 = scalar_lea.hbm %s485_s0, 1024 }
   0x3   :  { %s15_s10 = sshll.u32 %s387_s9, 4  ;;  %p316_p0 = scmp.ne.s32.totalorder %s485_s0, %s315_s13  ;;  %s16_s10 = int_to_ptr.vmem [resolvable:$true] %s15_s10 }
   0x4   :  { %p319_p1 = scmp.lt.u32.totalorder %s315_s13, %s485_s0 }
   0x6   :  { %p321_p2 = pnand %p319_p1, %p316_p0 }
   0x8   :  { %324 = shalt.err (!%p321_p2)
}
   0x9   :  { %s325_s18 = scalar_lea.vmem %s16_s10, 1024  ;;  %p330_p4 = scmp.lt.s32.totalorder %s16_s10, %s16_s10 }
   0xa   :  { %p326_p3 = scmp.ne.s32.totalorder %s16_s10, %s325_s18  ;;  %p331_p5 = scmp.lt.s32.totalorder %s325_s18, %s325_s18 }
   0xc   :  { %p332_p6 = por %p331_p5, %p330_p4 }
   0xe   :  { %p333_p7 = pnand %p332_p6, %p326_p3 }
  0x10   :  { %336 = shalt.err (!%p333_p7)
}
  0x11   :  { %s388_s19 = smov 128   ;;  %s389_s20 = smov 8  }
  0x12   :  { %21 = dma.hbm_to_vmem [thread:$0]  %s485_s0, 1024, %s16_s10, [#allocation4], %s388_s19, %s388_s19, %s389_s20  }
  0x13   :  { %s390_s23 = smov [#allocation6]   ;;  %s337_s27 = scalar_lea.hbm %s486_s1, 512 }
  0x14   :  { %s27_s24 = sshll.u32 %s390_s23, 4  ;;  %p338_p8 = scmp.ne.s32.totalorder %s486_s1, %s337_s27  ;;  %s28_s24 = int_to_ptr.vmem [resolvable:$true] %s27_s24 }
  0x15   :  { %p341_p9 = scmp.lt.u32.totalorder %s337_s27, %s486_s1 }
  0x17   :  { %p343_p10 = pnand %p341_p9, %p338_p8 }
  0x19   :  { %346 = shalt.err (!%p343_p10)
}
  0x1a   :  { %s347_s4 = scalar_lea.vmem %s28_s24, 512  ;;  %p352_p12 = scmp.lt.s32.totalorder %s28_s24, %s28_s24 }
  0x1b   :  { %p348_p11 = scmp.ne.s32.totalorder %s28_s24, %s347_s4  ;;  %p353_p13 = scmp.lt.s32.totalorder %s347_s4, %s347_s4 }
  0x1d   :  { %p354_p0 = por %p353_p13, %p352_p12 }
  0x1f   :  { %p355_p1 = pnand %p354_p0, %p348_p11 }
  0x21   :  { %358 = shalt.err (!%p355_p1)
}
  0x22   :  { %33 = dma.hbm_to_vmem [thread:$0]  %s486_s1, 512, %s28_s24, [#allocation7], %s388_s19, %s388_s19, %s389_s20  }
  0x23   :  { %381 = dma.done.wait [#allocation4], 1024  }
  0x24   :  { %382 = vsyncadd [#allocation4], 4294966272 }
  0x25   :  { %383 = dma.done.wait [#allocation7], 512  }
  0x26   :  { %384 = vsyncadd [#allocation7], 4294966784  ;;  %vm44_vm0 = vcmask 523264   ;;  %v391_v0 = vmov 0.0   ;;  %vm73_vm1 = vcmask 261120   ;;  %v69_v1 = vld [vmem:[#allocation6] sm:$0xff] }
  0x27   :  { %46 = vst.msk [vmem:[#allocation2 + $0x8] sm:$0xff] %vm44_vm0, %v391_v0  ;;  %45 = vst.msk [vmem:[#allocation2] sm:$0xff] %vm44_vm0, %v391_v0  ;;  %v70_v2 = vld [vmem:[#allocation6 + $0x8] sm:$0xff]  ;;  %v71_v3 = vld [vmem:[#allocation6 + $0x10] sm:$0xff]  ;;  %s392_s1 = smov [#allocation8]  }
  0x28   :  { %47 = vst.msk [vmem:[#allocation2 + $0x10] sm:$0xff] %vm44_vm0, %v391_v0  ;;  %48 = vst.msk [vmem:[#allocation2 + $0x18] sm:$0xff] %vm44_vm0, %v391_v0  ;;  %v297_v4 = vpack.c.bf16 %v70_v2, %v69_v1  ;;  %v72_v5 = vld [vmem:[#allocation6 + $0x18] sm:$0xff]  ;;  %v61_v6 = vld [vmem:[#allocation3] sm:$0xff]  ;;  %s244_s6 = sshll.u32 %s392_s1, 4  ;;  %s245_s6 = int_to_ptr.vmem [resolvable:$true] %s244_s6 }
  0x29   :  { %49 = vst.msk [vmem:[#allocation2 + $0x20] sm:$0xff] %vm44_vm0, %v391_v0  ;;  %50 = vst.msk [vmem:[#allocation2 + $0x28] sm:$0xff] %vm44_vm0, %v391_v0  ;;  %v65_v7 = vld [vmem:[#allocation3 + $0x20] sm:$0xff]  ;;  %v301_v8 = vpack.c.bf16 %v72_v5, %v71_v3  ;;  %285 = vmatprep.mubr.msk.f32.mxu0 %vm73_vm1, %v61_v6  ;;  %v62_v9 = vld [vmem:[#allocation3 + $0x8] sm:$0xff]  ;;  %s359_s7 = scalar_lea.vmem %s245_s6, 1024  ;;  %p364_p3 = scmp.lt.s32.totalorder %s245_s6, %s245_s6 }
  0x2a   :  { %51 = vst.msk [vmem:[#allocation2 + $0x30] sm:$0xff] %vm44_vm0, %v391_v0  ;;  %52 = vst.msk [vmem:[#allocation2 + $0x38] sm:$0xff] %vm44_vm0, %v391_v0  ;;  %291 = vmatprep.mubr.msk.f32.mxu1 %vm73_vm1, %v65_v7  ;;  %298 = vmatprep.subr.bf16.mxu0 %v297_v4  ;;  %v66_v10 = vld [vmem:[#allocation3 + $0x28] sm:$0xff]  ;;  %v63_v11 = vld [vmem:[#allocation3 + $0x10] sm:$0xff]  ;;  %p360_p2 = scmp.ne.s32.totalorder %s245_s6, %s359_s7  ;;  %p365_p4 = scmp.lt.s32.totalorder %s359_s7, %s359_s7 }
  0x2b   :  { %305 = vmatprep.subr.bf16.mxu1 %v297_v4  ;;  %300 = vmatpush3.bf16.msra.mxu0 %v297_v4  ;;  %v67_v12 = vld [vmem:[#allocation3 + $0x30] sm:$0xff]  ;;  %v64_v13 = vld [vmem:[#allocation3 + $0x18] sm:$0xff] }
  0x2c   :  { %307 = vmatpush3.bf16.msra.mxu1 %v297_v4  ;;  %302 = vmatprep.subr.bf16.mxu0 %v301_v8  ;;  %v68_v14 = vld [vmem:[#allocation3 + $0x38] sm:$0xff]  ;;  %p366_p5 = por %p365_p4, %p364_p3 }
  0x2d   :  { %306 = vmatprep.subr.bf16.mxu1 %v301_v8 }
  0x2e   :  { %v54_v15 = vld [vmem:[#allocation2 + $0x8] sm:$0xff]  ;;  %v53_v17 = vld [vmem:[#allocation2] sm:$0xff]  ;;  %p367_p6 = pnand %p366_p5, %p360_p2 }
  0x2f   :  { %304 = vmatpush3.bf16.msra.mxu0 %v301_v8  ;;  %v56_v27 = vld [vmem:[#allocation2 + $0x18] sm:$0xff]  ;;  %v55_v29 = vld [vmem:[#allocation2 + $0x10] sm:$0xff] }
  0x30   :  { %308 = vmatpush3.bf16.msra.mxu1 %v301_v8  ;;  %v58_v16 = vld [vmem:[#allocation2 + $0x28] sm:$0xff]  ;;  %v57_v18 = vld [vmem:[#allocation2 + $0x20] sm:$0xff] }
  0x31   :  { %v60_v28 = vld [vmem:[#allocation2 + $0x38] sm:$0xff]  ;;  %v59_v30 = vld [vmem:[#allocation2 + $0x30] sm:$0xff] }
  0x32   :  { %286 = vmatmul.mubr.msk.f32.vlgmr.msra.gmra.mrb[0].mxu0 %vm73_vm1, %v62_v9 }
  0x33   :  { %292 = vmatmul.mubr.msk.f32.vlgmr.msra.gmra.mrb[0].mxu1 %vm73_vm1, %v66_v10  ;;  %288 = vmatprep.mubr.msk.f32.mxu0 %vm73_vm1, %v63_v11 }
  0x34   :  { %294 = vmatprep.mubr.msk.f32.mxu1 %vm73_vm1, %v67_v12 }
  0x36   :  { %289 = vmatmul.mubr.msk.f32.gmra.mrb[2].mxu0 %vm73_vm1, %v64_v13 }
  0x37   :  { %295 = vmatmul.mubr.msk.f32.gmra.mrb[2].mxu1 %vm73_vm1, %v68_v14 }
 0x105   :  { %v287_v19 = vpop.f32.mrb[0].mxu0 }
 0x106   :  { %v293_v20 = vpop.f32.mrb[0].mxu1  ;;  %v204_v21 = vadd.f32 %v287_v19, %v54_v15  ;;  %v164_v23 = vpop.f32.mrb[1].mxu0 }
 0x107   :  { %v208_v22 = vadd.f32 %v293_v20, %v58_v16  ;;  %v184_v24 = vpop.f32.mrb[1].mxu1  ;;  %v203_v25 = vadd.f32 %v164_v23, %v53_v17 }
 0x108   :  { %v207_v26 = vadd.f32 %v184_v24, %v57_v18  ;;  %213 = vst.msk [vmem:[#allocation2 + $0x8] sm:$0xff] %vm44_vm0, %v204_v21 }
 0x109   :  { %217 = vst.msk [vmem:[#allocation2 + $0x28] sm:$0xff] %vm44_vm0, %v208_v22  ;;  %212 = vst.msk [vmem:[#allocation2] sm:$0xff] %vm44_vm0, %v203_v25  ;;  %v290_v31 = vpop.f32.mrb[2].mxu0 }
 0x10a   :  { %216 = vst.msk [vmem:[#allocation2 + $0x20] sm:$0xff] %vm44_vm0, %v207_v26  ;;  %v296_v32 = vpop.f32.mrb[2].mxu1  ;;  %v206_v33 = vadd.f32 %v290_v31, %v56_v27  ;;  %v174_v35 = vpop.f32.mrb[3].mxu0 }
 0x10b   :  { %v210_v34 = vadd.f32 %v296_v32, %v60_v28  ;;  %v194_v36 = vpop.f32.mrb[3].mxu1  ;;  %v205_v37 = vadd.f32 %v174_v35, %v55_v29 }
 0x10c   :  { %v209_v38 = vadd.f32 %v194_v36, %v59_v30  ;;  %215 = vst.msk [vmem:[#allocation2 + $0x18] sm:$0xff] %vm44_vm0, %v206_v33 }
 0x10d   :  { %219 = vst.msk [vmem:[#allocation2 + $0x38] sm:$0xff] %vm44_vm0, %v210_v34  ;;  %214 = vst.msk [vmem:[#allocation2 + $0x10] sm:$0xff] %vm44_vm0, %v205_v37 }
 0x10e   :  { %218 = vst.msk [vmem:[#allocation2 + $0x30] sm:$0xff] %vm44_vm0, %v209_v38 }
 0x10f   :  { %v224_v39 = vld [vmem:[#allocation2 + $0x8] sm:$0xff] }
 0x110   :  { %v228_v40 = vld [vmem:[#allocation2 + $0x28] sm:$0xff]  ;;  %v223_v41 = vld [vmem:[#allocation2] sm:$0xff]  ;;  %232 = vst.msk [vmem:[#allocation8 + $0x8] sm:$0xff] %vm44_vm0, %v224_v39 }
 0x111   :  { %v227_v42 = vld [vmem:[#allocation2 + $0x20] sm:$0xff]  ;;  %236 = vst.msk [vmem:[#allocation8 + $0x28] sm:$0xff] %vm44_vm0, %v228_v40  ;;  %231 = vst.msk [vmem:[#allocation8] sm:$0xff] %vm44_vm0, %v223_v41 }
 0x112   :  { %235 = vst.msk [vmem:[#allocation8 + $0x20] sm:$0xff] %vm44_vm0, %v227_v42 }
 0x113   :  { %v226_v43 = vld [vmem:[#allocation2 + $0x18] sm:$0xff] }
 0x114   :  { %v230_v44 = vld [vmem:[#allocation2 + $0x38] sm:$0xff]  ;;  %v225_v45 = vld [vmem:[#allocation2 + $0x10] sm:$0xff]  ;;  %234 = vst.msk [vmem:[#allocation8 + $0x18] sm:$0xff] %vm44_vm0, %v226_v43 }
 0x115   :  { %v229_v46 = vld [vmem:[#allocation2 + $0x30] sm:$0xff]  ;;  %238 = vst.msk [vmem:[#allocation8 + $0x38] sm:$0xff] %vm44_vm0, %v230_v44  ;;  %233 = vst.msk [vmem:[#allocation8 + $0x10] sm:$0xff] %vm44_vm0, %v225_v45 }
 0x116   :  { %237 = vst.msk [vmem:[#allocation8 + $0x30] sm:$0xff] %vm44_vm0, %v229_v46 }
 0x117   :  { %370 = shalt.err (!%p367_p6)
}
 0x118   :  { %s371_s10 = scalar_lea.hbm %s487_s2, 1024 }
 0x119   :  { %p372_p7 = scmp.ne.s32.totalorder %s487_s2, %s371_s10  ;;  %p375_p8 = scmp.lt.u32.totalorder %s371_s10, %s487_s2 }
 0x11b   :  { %p377_p9 = pnand %p375_p8, %p372_p7 }
 0x11d   :  { %380 = shalt.err (!%p377_p9)
}
 0x11e   :  { %250 = dma.vmem_to_hbm [thread:$0]  %s245_s6, 1024, %s487_s2, [#allocation5], %s388_s19, %s388_s19, %s389_s20  }
 0x11f   :  { %385 = dma.done.wait [#allocation5], 1024  }
 0x120   :  { %386 = vsyncadd [#allocation5], 4294966272 }
 0x121   :  { %254 = vsyncpa [#allocation4], 1 }
 0x122   :  { %255 = vsyncpa [#allocation7], 1 }
 0x123   :  { %256 = vsyncpa [#allocation5], 1 }

</bundles_post_ra>
